<compile_context>
chip_gen: v7x
topology: tpu7x:2x2x1
jax: 0.10.0
libtpu: 0.0.40
codegen_flags: <defaults>
</compile_context>

<pallas_src>
import functools

import jax
import jax.numpy as jnp
from jax.experimental import pallas as pl
from jax.experimental.pallas import tpu as pltpu


_VMEM_LIMIT = 32 * 1024 * 1024   # safe on v5e (128 MiB), v6e (128 MiB), v7x (64 MiB)


def _round_up(x, m):
    return ((x + m - 1) // m) * m


def _pad_rows(x, mult):
    m = x.shape[0]
    mp = _round_up(m, mult)
    if mp != m:
        x = jnp.pad(x, ((0, mp - m),) + ((0, 0),) * (x.ndim - 1))
    return x


# -----------------------------------------------------------------------------
# Kernel 1: RCNN_base stand-in — 3->Cb "1x1 conv" + ReLU.
# Cin=3 is kept OFF the MXU: three VPU broadcast-FMA passes instead of a padded
# 3-wide contraction.  Runs on already-strided pixels.
# -----------------------------------------------------------------------------
def _base_conv_kernel(x_ref, w_ref, b_ref, o_ref):
    x = x_ref[...]                                  # [tm, 3]  f32
    w = w_ref[...]                                  # [3, Cb]  f32
    acc = (x[:, 0:1] * w[0:1, :]
           + x[:, 1:2] * w[1:2, :]
           + x[:, 2:3] * w[2:3, :]
           + b_ref[...])
    o_ref[...] = jnp.maximum(acc, 0.0).astype(o_ref.dtype)


def base_conv(x2d, w, b, *, tm=512):
    """x2d: [M, 3] f32 pixels (already strided).  Returns bf16 [M, Cb]."""
    M, Cin = x2d.shape
    Cb = w.shape[1]
    tm = min(tm, _round_up(M, 16))
    x2d = _pad_rows(x2d, tm)
    Mp = x2d.shape[0]
    out = pl.pallas_call(
        _base_conv_kernel,
        out_shape=jax.ShapeDtypeStruct((Mp, Cb), jnp.bfloat16),
        grid_spec=pltpu.PrefetchScalarGridSpec(
            num_scalar_prefetch=0,
            grid=(Mp // tm,),
            in_specs=[
                pl.BlockSpec((tm, Cin), lambda i: (i, 0)),
                pl.BlockSpec((Cin, Cb), lambda i: (0, 0)),
                pl.BlockSpec((1, Cb), lambda i: (0, 0)),
            ],
            out_specs=pl.BlockSpec((tm, Cb), lambda i: (i, 0)),
        ),
        compiler_params=pltpu.CompilerParams(
            dimension_semantics=("parallel",),
            vmem_limit_bytes=_VMEM_LIMIT),
    )(x2d, w, b.reshape(1, Cb))
    return out[:M]


# -----------------------------------------------------------------------------
# Kernel 2: fused RCNN_conv_new + PS_Net (_PSCONV):
#   y = relu(x @ Wn + bn);  z = y @ Wps + bps
# The intermediate y never touches HBM.  PS output is padded to 128 lanes so
# the kernel stores are full-width vst (the real V*K channels are sliced off
# in the wrapper).
# -----------------------------------------------------------------------------
def _convnew_ps_kernel(x_ref, wn_ref, bn_ref, wp_ref, bp_ref, o_ref):
    x = x_ref[...].astype(jnp.bfloat16)
    y = jnp.dot(x, wn_ref[...], preferred_element_type=jnp.float32) + bn_ref[...]
    y = jnp.maximum(y, 0.0).astype(jnp.bfloat16)
    z = jnp.dot(y, wp_ref[...], preferred_element_type=jnp.float32) + bp_ref[...]
    o_ref[...] = z.astype(o_ref.dtype)


def convnew_ps(x2d, wn, bn, wp_pad, bp_pad, *, tm=512):
    """x2d: [M, Cb] bf16. Returns bf16 [M, Cp_pad]."""
    M, Cb = x2d.shape
    Cn = wn.shape[1]
    Cp = wp_pad.shape[1]
    tm = min(tm, _round_up(M, 16))
    x2d = _pad_rows(x2d, tm)
    Mp = x2d.shape[0]
    out = pl.pallas_call(
        _convnew_ps_kernel,
        out_shape=jax.ShapeDtypeStruct((Mp, Cp), jnp.bfloat16),
        grid_spec=pltpu.PrefetchScalarGridSpec(
            num_scalar_prefetch=0,
            grid=(Mp // tm,),
            in_specs=[
                pl.BlockSpec((tm, Cb), lambda i: (i, 0)),
                pl.BlockSpec((Cb, Cn), lambda i: (0, 0)),
                pl.BlockSpec((1, Cn), lambda i: (0, 0)),
                pl.BlockSpec((Cn, Cp), lambda i: (0, 0)),
                pl.BlockSpec((1, Cp), lambda i: (0, 0)),
            ],
            out_specs=pl.BlockSpec((tm, Cp), lambda i: (i, 0)),
        ),
        compiler_params=pltpu.CompilerParams(
            dimension_semantics=("parallel",),
            vmem_limit_bytes=_VMEM_LIMIT),
    )(x2d, wn, bn.reshape(1, Cn), wp_pad, bp_pad.reshape(1, Cp))
    return out[:M]


# -----------------------------------------------------------------------------
# Kernel 3: RCNN_Net head.
#   [cls | bbox] = light @ [Wc | Wb] + [bc | bb]   (single MXU pass)
#   cls_prob = softmax(cls, dim=1)  (EUP exp + approx reciprocal)
# Tiled over rois (N) and marked "parallel" so it shards across TensorCores.
# -----------------------------------------------------------------------------
def _head_kernel(light_ref, w_ref, b_ref, cls_prob_ref, bbox_ref, *, nc, nb):
    x = light_ref[...].astype(jnp.bfloat16)
    out = jnp.dot(x, w_ref[...], preferred_element_type=jnp.float32) + b_ref[...]
    cls = out[:, :nc]
    bbox = out[:, nc:nc + nb]
    m = jnp.max(cls, axis=1, keepdims=True)
    e = jnp.exp(cls - m)
    inv = pl.reciprocal(jnp.sum(e, axis=1, keepdims=True), approx=True)
    cls_prob_ref[...] = (e * inv).astype(cls_prob_ref.dtype)
    bbox_ref[...] = bbox.astype(bbox_ref.dtype)


def rcnn_head(light, w_head, b_head, nc, nb, *, tn=128):
    """light: [N, D] f32; w_head: [D, nc+nb] bf16; b_head: [nc+nb] f32."""
    N, D = light.shape
    tn = min(tn, _round_up(N, 16))
    light = _pad_rows(light, tn)
    Np = light.shape[0]
    kernel = functools.partial(_head_kernel, nc=nc, nb=nb)
    cls_prob, bbox = pl.pallas_call(
        kernel,
        out_shape=(jax.ShapeDtypeStruct((Np, nc), jnp.float32),
                   jax.ShapeDtypeStruct((Np, nb), jnp.float32)),
        grid_spec=pltpu.PrefetchScalarGridSpec(
            num_scalar_prefetch=0,
            grid=(Np // tn,),
            in_specs=[
                pl.BlockSpec((tn, D), lambda i: (i, 0)),
                pl.BlockSpec((D, nc + nb), lambda i: (0, 0)),
                pl.BlockSpec((1, nc + nb), lambda i: (0, 0)),
            ],
            out_specs=(pl.BlockSpec((tn, nc), lambda i: (i, 0)),
                       pl.BlockSpec((tn, nb), lambda i: (i, 0))),
        ),
        compiler_params=pltpu.CompilerParams(
            dimension_semantics=("parallel",),
            vmem_limit_bytes=_VMEM_LIMIT),
    )(light, w_head, b_head.reshape(1, nc + nb))
    return cls_prob[:N], bbox[:N]


# -----------------------------------------------------------------------------
# RoIAlignAvg stand-in (plain JAX glue): bilinear sample at each output-bin
# center.  Data-dependent gather — kept outside the Pallas kernels.
# TODO(synk): true RoIAlignAvg ((P+1)x(P+1) align + 2x2 avg-pool) needs a
#             scalar-prefetch DMA-gather Pallas kernel; simplified to
#             1-sample-per-bin (only matters for realistic roi counts).
# -----------------------------------------------------------------------------
def roi_align_avg(feat_nhwc, rois, spatial_scale, P):
    B, H, W, C = feat_nhwc.shape

    def one(roi):
        b = roi[0].astype(jnp.int32)
        x1 = roi[1] * spatial_scale
        y1 = roi[2] * spatial_scale
        x2 = roi[3] * spatial_scale
        y2 = roi[4] * spatial_scale
        rw = jnp.maximum(x2 - x1, 1.0)
        rh = jnp.maximum(y2 - y1, 1.0)
        xs = jnp.clip(x1 + (jnp.arange(P) + 0.5) * (rw / P), 0.0, W - 1.0)
        ys = jnp.clip(y1 + (jnp.arange(P) + 0.5) * (rh / P), 0.0, H - 1.0)
        fmap = feat_nhwc[b]                           # [H, W, C]
        y0 = jnp.floor(ys).astype(jnp.int32)
        x0 = jnp.floor(xs).astype(jnp.int32)
        y1i = jnp.minimum(y0 + 1, H - 1)
        x1i = jnp.minimum(x0 + 1, W - 1)
        wy = (ys - y0)[:, None, None]
        wx = (xs - x0)[None, :, None]
        v00 = fmap[y0][:, x0]
        v01 = fmap[y0][:, x1i]
        v10 = fmap[y1i][:, x0]
        v11 = fmap[y1i][:, x1i]
        return (v00 * (1 - wy) * (1 - wx) + v01 * (1 - wy) * wx +
                v10 * wy * (1 - wx) + v11 * wy * wx)  # [P, P, C]

    return jax.vmap(one)(rois)                        # [N, P, P, C]


# -----------------------------------------------------------------------------
# Parameters (synthetic stand-ins for the subclass-defined weights).
# -----------------------------------------------------------------------------
def build_params(key, *, c_base, c_new, V, K, P, n_classes, cps_pad=128):
    ks = jax.random.split(key, 5)
    std = 0.01
    D = K * P * P
    VK = V * K
    w_ps = jax.random.normal(ks[2], (c_new, VK), jnp.float32) * std
    w_ps_pad = jnp.zeros((c_new, cps_pad), jnp.float32).at[:, :VK].set(w_ps)
    w_cls = jax.random.normal(ks[3], (D, n_classes), jnp.float32) * std
    w_bbox = jax.random.normal(ks[4], (D, 4 * n_classes), jnp.float32) * std
    return dict(
        w_base=jax.random.normal(ks[0], (3, c_base), jnp.float32) * std,
        b_base=jnp.zeros((c_base,), jnp.float32),
        w_new=(jax.random.normal(ks[1], (c_base, c_new), jnp.float32) * std
               ).astype(jnp.bfloat16),
        b_new=jnp.zeros((c_new,), jnp.float32),
        w_ps_pad=w_ps_pad.astype(jnp.bfloat16),
        b_ps_pad=jnp.zeros((cps_pad,), jnp.float32),
        w_head=jnp.concatenate([w_cls, w_bbox], axis=1).astype(jnp.bfloat16),
        b_head=jnp.zeros((n_classes + 4 * n_classes,), jnp.float32),
    )


# -----------------------------------------------------------------------------
# Full eval-mode forward.
# -----------------------------------------------------------------------------
def faster_rcnn_forward(params, im_data, im_info, gt_boxes1, num_boxes, rois,
                        *, V, K, P, n_classes, stride):
    B = im_data.shape[0]

    # --- RCNN_base stand-in: stride FIRST, then 3->Cb VPU conv + ReLU -------
    # TODO(synk): real subclass-defined ResNet backbone not reproducible here.
    x_s = im_data[:, :, ::stride, ::stride]                  # [B, 3, Hf, Wf]
    x_nhwc = jnp.transpose(x_s, (0, 2, 3, 1))                # [B, Hf, Wf, 3]
    Bf, Hf, Wf, _ = x_nhwc.shape
    M = Bf * Hf * Wf
    base = base_conv(x_nhwc.reshape(M, 3),
                     params["w_base"], params["b_base"])     # bf16 [M, Cb]

    # --- RCNN_rpn: anchors + NMS are data-dependent; rois supplied externally.
    # TODO(synk): RPN proposal generation (anchor decode + NMS) not translated.
    rpn_loss_cls = 0.0
    rpn_loss_bbox = 0.0

    # --- fused RCNN_conv_new + PS_Net ---------------------------------------
    vs_flat = convnew_ps(base, params["w_new"], params["b_new"],
                         params["w_ps_pad"], params["b_ps_pad"])  # bf16 [M, 128]
    VK = V * K
    vs_feat = vs_flat[:, :VK].astype(jnp.float32).reshape(Bf, Hf, Wf, VK)

    # --- RoIAlign on vs_feat with the proposals -----------------------------
    rois_flat = rois.reshape(-1, 5)
    pooled = roi_align_avg(vs_feat, rois_flat, 1.0 / stride, P)   # [N, P, P, VK]
    N = pooled.shape[0]
    D = P * P * K
    # view-axis sum in NHWC layout (channel index = v*K + k); no NCHW transpose.
    pooled_light = pooled.reshape(N, P, P, V, K).sum(axis=3).reshape(N, D)

    # --- RCNN_Net FC head + softmax (Pallas) ---------------------------------
    cls_prob, bbox_pred = rcnn_head(pooled_light, params["w_head"],
                                    params["b_head"], n_classes, 4 * n_classes)

    R = rois.shape[1]
    cls_prob = cls_prob.reshape(B, R, -1)
    bbox_pred = bbox_pred.reshape(B, R, -1)

    # eval mode: all RCNN losses are 0, rois_label is None
    return (rois, cls_prob, bbox_pred, rpn_loss_cls, rpn_loss_bbox,
            0.0, 0.0, 0.0, None)


if __name__ == "__main__":
    # Small, module-consistent configuration
    B, IMG = 2, 32              # batch, square image size
    STRIDE = 4                  # synthetic feature stride (orig 16)
    C_BASE, C_NEW = 128, 128    # backbone / conv_new channels (orig 1024); lane-dense
    V, K, P = 5, 8, 4           # view_size_fg=5, k, POOLING_SIZE (orig 7)
    N_CLASSES = 4               # len(classes); class_agnostic=False -> 4*n_classes bbox
    R = 8                       # rois per image

    key = jax.random.PRNGKey(0)
    k_im, k_roi, k_gt, k_par = jax.random.split(key, 4)

    im_data = jax.random.normal(k_im, (B, 3, IMG, IMG), jnp.float32)
    im_info = jnp.tile(jnp.array([[IMG, IMG, 1.0]], jnp.float32), (B, 1))
    gt_boxes1 = jax.random.uniform(k_gt, (B, R, 6), minval=0.0, maxval=IMG - 1.0)
    num_boxes = jnp.full((B,), R, jnp.int32)

    # deterministic synthetic proposals (batch_idx, x1, y1, x2, y2) in image coords
    xy = jax.random.uniform(k_roi, (B, R, 4), minval=0.0, maxval=IMG - 1.0)
    x1 = jnp.minimum(xy[..., 0], xy[..., 2])
    x2 = jnp.maximum(xy[..., 0], xy[..., 2]) + 1.0
    y1 = jnp.minimum(xy[..., 1], xy[..., 3])
    y2 = jnp.maximum(xy[..., 1], xy[..., 3]) + 1.0
    bidx = jnp.broadcast_to(jnp.arange(B, dtype=jnp.float32)[:, None], (B, R))
    rois = jnp.stack([bidx, x1, y1, x2, y2], axis=-1)        # [B, R, 5]

    params = build_params(k_par, c_base=C_BASE, c_new=C_NEW,
                          V=V, K=K, P=P, n_classes=N_CLASSES)

    fwd = jax.jit(functools.partial(faster_rcnn_forward,
                                    V=V, K=K, P=P, n_classes=N_CLASSES,
                                    stride=STRIDE))
    out = fwd(params, im_data, im_info, gt_boxes1, num_boxes, rois)
    rois_out, cls_prob, bbox_pred = out[0], out[1], out[2]
    jax.block_until_ready((rois_out, cls_prob, bbox_pred))

    assert cls_prob.shape == (B, R, N_CLASSES)
    assert bbox_pred.shape == (B, R, 4 * N_CLASSES)
    # approx reciprocal in the softmax -> slightly relaxed tolerance
    assert bool(jnp.allclose(jnp.sum(cls_prob, axis=-1), 1.0, atol=1e-2))
    assert bool(jnp.all(jnp.isfinite(bbox_pred)))
    print("KERNEL_OK")
</pallas_src>

<mosaic_0001>
module attributes {stable_mosaic.version = 11 : i64} {
  func.func @_base_conv_kernel(%arg0: i32, %arg1: memref<128x3xf32, #tpu.memory_space<vmem>>, %arg2: memref<3x128xf32, #tpu.memory_space<vmem>>, %arg3: memref<1x128xf32, #tpu.memory_space<vmem>>, %arg4: memref<128x128xbf16, #tpu.memory_space<vmem>>) attributes {dimension_semantics = [#tpu.dimension_semantics<parallel>], iteration_bounds = array<i64: 1>, scalar_prefetch = 0 : i64, scratch_operands = 0 : i64, tpu.core_type = #tpu.core_type<tc>, window_params = [{transform_indices = @transform_0, window_bounds = array<i64: 128, 3>}, {pipeline_mode = #tpu.pipeline_mode<synchronous>, transform_indices = @transform_1, window_bounds = array<i64: 3, 128>}, {pipeline_mode = #tpu.pipeline_mode<synchronous>, transform_indices = @transform_2, window_bounds = array<i64: 1, 128>}, {transform_indices = @transform_3, window_bounds = array<i64: 128, 128>}]} {
    %c0 = arith.constant 0 : index
    %c0_0 = arith.constant 0 : index
    %0 = vector.load %arg1[%c0, %c0_0] : memref<128x3xf32, #tpu.memory_space<vmem>>, vector<128x3xf32>
    %c0_1 = arith.constant 0 : index
    %c0_2 = arith.constant 0 : index
    %1 = vector.load %arg2[%c0_1, %c0_2] : memref<3x128xf32, #tpu.memory_space<vmem>>, vector<3x128xf32>
    %2 = vector.extract_strided_slice %0 {offsets = [0, 0], sizes = [128, 1], strides = [1, 1]} : vector<128x3xf32> to vector<128x1xf32>
    %3 = vector.extract_strided_slice %1 {offsets = [0, 0], sizes = [1, 128], strides = [1, 1]} : vector<3x128xf32> to vector<1x128xf32>
    %4 = vector.broadcast %2 : vector<128x1xf32> to vector<128x128xf32>
    %5 = vector.broadcast %3 : vector<1x128xf32> to vector<128x128xf32>
    %6 = arith.mulf %4, %5 : vector<128x128xf32>
    %7 = vector.extract_strided_slice %0 {offsets = [0, 1], sizes = [128, 1], strides = [1, 1]} : vector<128x3xf32> to vector<128x1xf32>
    %8 = vector.extract_strided_slice %1 {offsets = [1, 0], sizes = [1, 128], strides = [1, 1]} : vector<3x128xf32> to vector<1x128xf32>
    %9 = vector.broadcast %7 : vector<128x1xf32> to vector<128x128xf32>
    %10 = vector.broadcast %8 : vector<1x128xf32> to vector<128x128xf32>
    %11 = arith.mulf %9, %10 : vector<128x128xf32>
    %12 = arith.addf %6, %11 : vector<128x128xf32>
    %13 = vector.extract_strided_slice %0 {offsets = [0, 2], sizes = [128, 1], strides = [1, 1]} : vector<128x3xf32> to vector<128x1xf32>
    %14 = vector.extract_strided_slice %1 {offsets = [2, 0], sizes = [1, 128], strides = [1, 1]} : vector<3x128xf32> to vector<1x128xf32>
    %15 = vector.broadcast %13 : vector<128x1xf32> to vector<128x128xf32>
    %16 = vector.broadcast %14 : vector<1x128xf32> to vector<128x128xf32>
    %17 = arith.mulf %15, %16 : vector<128x128xf32>
    %18 = arith.addf %12, %17 : vector<128x128xf32>
    %c0_3 = arith.constant 0 : index
    %c0_4 = arith.constant 0 : index
    %19 = vector.load %arg3[%c0_3, %c0_4] : memref<1x128xf32, #tpu.memory_space<vmem>>, vector<1x128xf32>
    %20 = vector.broadcast %19 : vector<1x128xf32> to vector<128x128xf32>
    %21 = arith.addf %18, %20 : vector<128x128xf32>
    %cst = arith.constant 0.000000e+00 : f32
    %22 = vector.broadcast %cst : f32 to vector<128x128xf32>
    %23 = arith.maximumf %21, %22 : vector<128x128xf32>
    %24 = arith.truncf %23 : vector<128x128xf32> to vector<128x128xbf16>
    %c0_5 = arith.constant 0 : index
    %c0_6 = arith.constant 0 : index
    %25 = vector.load %arg4[%c0_5, %c0_6] : memref<128x128xbf16, #tpu.memory_space<vmem>>, vector<128x128xbf16>
    tpu.vector_store %arg4[%c0_5, %c0_6], %24 {strides = array<i32>} : memref<128x128xbf16, #tpu.memory_space<vmem>>, vector<128x128xbf16>,
    return
  }
  func.func @transform_0(%arg0: i32) -> (i32, i32) {
    %c0_i32 = arith.constant 0 : i32
    %c0_i32_0 = arith.constant 0 : i32
    return %arg0, %c0_i32 : i32, i32
  }
  func.func @transform_1(%arg0: i32) -> (i32, i32) {
    %c0_i32 = arith.constant 0 : i32
    %c0_i32_0 = arith.constant 0 : i32
    %c0_i32_1 = arith.constant 0 : i32
    return %c0_i32, %c0_i32_0 : i32, i32
  }
  func.func @transform_2(%arg0: i32) -> (i32, i32) {
    %c0_i32 = arith.constant 0 : i32
    %c0_i32_0 = arith.constant 0 : i32
    %c0_i32_1 = arith.constant 0 : i32
    return %c0_i32, %c0_i32_0 : i32, i32
  }
  func.func @transform_3(%arg0: i32) -> (i32, i32) {
    %c0_i32 = arith.constant 0 : i32
    %c0_i32_0 = arith.constant 0 : i32
    return %arg0, %c0_i32 : i32, i32
  }
}

module attributes {stable_mosaic.version = 11 : i64} {
  func.func @_convnew_ps_kernel(%arg0: i32, %arg1: memref<128x128xbf16, #tpu.memory_space<vmem>>, %arg2: memref<128x128xbf16, #tpu.memory_space<vmem>>, %arg3: memref<1x128xf32, #tpu.memory_space<vmem>>, %arg4: memref<128x128xbf16, #tpu.memory_space<vmem>>, %arg5: memref<1x128xf32, #tpu.memory_space<vmem>>, %arg6: memref<128x128xbf16, #tpu.memory_space<vmem>>) attributes {dimension_semantics = [#tpu.dimension_semantics<parallel>], iteration_bounds = array<i64: 1>, scalar_prefetch = 0 : i64, scratch_operands = 0 : i64, tpu.core_type = #tpu.core_type<tc>, window_params = [{transform_indices = @transform_0, window_bounds = array<i64: 128, 128>}, {pipeline_mode = #tpu.pipeline_mode<synchronous>, transform_indices = @transform_1, window_bounds = array<i64: 128, 128>}, {pipeline_mode = #tpu.pipeline_mode<synchronous>, transform_indices = @transform_2, window_bounds = array<i64: 1, 128>}, {pipeline_mode = #tpu.pipeline_mode<synchronous>, transform_indices = @transform_3, window_bounds = array<i64: 128, 128>}, {pipeline_mode = #tpu.pipeline_mode<synchronous>, transform_indices = @transform_4, window_bounds = array<i64: 1, 128>}, {transform_indices = @transform_5, window_bounds = array<i64: 128, 128>}]} {
    %c0 = arith.constant 0 : index
    %c0_0 = arith.constant 0 : index
    %0 = vector.load %arg1[%c0, %c0_0] : memref<128x128xbf16, #tpu.memory_space<vmem>>, vector<128x128xbf16>
    %c0_1 = arith.constant 0 : index
    %c0_2 = arith.constant 0 : index
    %1 = vector.load %arg2[%c0_1, %c0_2] : memref<128x128xbf16, #tpu.memory_space<vmem>>, vector<128x128xbf16>
    %cst = arith.constant dense<0.000000e+00> : vector<128x128xf32>
    %2 = tpu.matmul %0, %1, %cst {dimension_numbers = #tpu.dot_dimension_numbers<[1], [0], [0], [1], [0, 0, 1, 1], [], []>} : vector<128x128xbf16>, vector<128x128xbf16>, vector<128x128xf32> -> vector<128x128xf32>
    %c0_3 = arith.constant 0 : index
    %c0_4 = arith.constant 0 : index
    %3 = vector.load %arg3[%c0_3, %c0_4] : memref<1x128xf32, #tpu.memory_space<vmem>>, vector<1x128xf32>
    %4 = vector.broadcast %3 : vector<1x128xf32> to vector<128x128xf32>
    %5 = arith.addf %2, %4 : vector<128x128xf32>
    %cst_5 = arith.constant 0.000000e+00 : f32
    %6 = vector.broadcast %cst_5 : f32 to vector<128x128xf32>
    %7 = arith.maximumf %5, %6 : vector<128x128xf32>
    %8 = arith.truncf %7 : vector<128x128xf32> to vector<128x128xbf16>
    %c0_6 = arith.constant 0 : index
    %c0_7 = arith.constant 0 : index
    %9 = vector.load %arg4[%c0_6, %c0_7] : memref<128x128xbf16, #tpu.memory_space<vmem>>, vector<128x128xbf16>
    %cst_8 = arith.constant dense<0.000000e+00> : vector<128x128xf32>
    %10 = tpu.matmul %8, %9, %cst_8 {dimension_numbers = #tpu.dot_dimension_numbers<[1], [0], [0], [1], [0, 0, 1, 1], [], []>} : vector<128x128xbf16>, vector<128x128xbf16>, vector<128x128xf32> -> vector<128x128xf32>
    %c0_9 = arith.constant 0 : index
    %c0_10 = arith.constant 0 : index
    %11 = vector.load %arg5[%c0_9, %c0_10] : memref<1x128xf32, #tpu.memory_space<vmem>>, vector<1x128xf32>
    %12 = vector.broadcast %11 : vector<1x128xf32> to vector<128x128xf32>
    %13 = arith.addf %10, %12 : vector<128x128xf32>
    %14 = arith.truncf %13 : vector<128x128xf32> to vector<128x128xbf16>
    %c0_11 = arith.constant 0 : index
    %c0_12 = arith.constant 0 : index
    %15 = vector.load %arg6[%c0_11, %c0_12] : memref<128x128xbf16, #tpu.memory_space<vmem>>, vector<128x128xbf16>
    tpu.vector_store %arg6[%c0_11, %c0_12], %14 {strides = array<i32>} : memref<128x128xbf16, #tpu.memory_space<vmem>>, vector<128x128xbf16>,
    return
  }
  func.func @transform_0(%arg0: i32) -> (i32, i32) {
    %c0_i32 = arith.constant 0 : i32
    %c0_i32_0 = arith.constant 0 : i32
    return %arg0, %c0_i32 : i32, i32
  }
  func.func @transform_1(%arg0: i32) -> (i32, i32) {
    %c0_i32 = arith.constant 0 : i32
    %c0_i32_0 = arith.constant 0 : i32
    %c0_i32_1 = arith.constant 0 : i32
    return %c0_i32, %c0_i32_0 : i32, i32
  }
  func.func @transform_2(%arg0: i32) -> (i32, i32) {
    %c0_i32 = arith.constant 0 : i32
    %c0_i32_0 = arith.constant 0 : i32
    %c0_i32_1 = arith.constant 0 : i32
    return %c0_i32, %c0_i32_0 : i32, i32
  }
  func.func @transform_3(%arg0: i32) -> (i32, i32) {
    %c0_i32 = arith.constant 0 : i32
    %c0_i32_0 = arith.constant 0 : i32
    %c0_i32_1 = arith.constant 0 : i32
    return %c0_i32, %c0_i32_0 : i32, i32
  }
  func.func @transform_4(%arg0: i32) -> (i32, i32) {
    %c0_i32 = arith.constant 0 : i32
    %c0_i32_0 = arith.constant 0 : i32
    %c0_i32_1 = arith.constant 0 : i32
    return %c0_i32, %c0_i32_0 : i32, i32
  }
  func.func @transform_5(%arg0: i32) -> (i32, i32) {
    %c0_i32 = arith.constant 0 : i32
    %c0_i32_0 = arith.constant 0 : i32
    return %arg0, %c0_i32 : i32, i32
  }
}

module attributes {stable_mosaic.version = 11 : i64} {
  func.func @_head_kernel(%arg0: i32, %arg1: memref<16x128xf32, #tpu.memory_space<vmem>>, %arg2: memref<128x20xbf16, #tpu.memory_space<vmem>>, %arg3: memref<1x20xf32, #tpu.memory_space<vmem>>, %arg4: memref<16x4xf32, #tpu.memory_space<vmem>>, %arg5: memref<16x16xf32, #tpu.memory_space<vmem>>) attributes {dimension_semantics = [#tpu.dimension_semantics<parallel>], iteration_bounds = array<i64: 1>, scalar_prefetch = 0 : i64, scratch_operands = 0 : i64, tpu.core_type = #tpu.core_type<tc>, window_params = [{transform_indices = @transform_0, window_bounds = array<i64: 16, 128>}, {pipeline_mode = #tpu.pipeline_mode<synchronous>, transform_indices = @transform_1, window_bounds = array<i64: 128, 20>}, {pipeline_mode = #tpu.pipeline_mode<synchronous>, transform_indices = @transform_2, window_bounds = array<i64: 1, 20>}, {transform_indices = @transform_3, window_bounds = array<i64: 16, 4>}, {transform_indices = @transform_4, window_bounds = array<i64: 16, 16>}]} {
    %c0 = arith.constant 0 : index
    %c0_0 = arith.constant 0 : index
    %0 = vector.load %arg1[%c0, %c0_0] : memref<16x128xf32, #tpu.memory_space<vmem>>, vector<16x128xf32>
    %1 = arith.truncf %0 : vector<16x128xf32> to vector<16x128xbf16>
    %c0_1 = arith.constant 0 : index
    %c0_2 = arith.constant 0 : index
    %2 = vector.load %arg2[%c0_1, %c0_2] : memref<128x20xbf16, #tpu.memory_space<vmem>>, vector<128x20xbf16>
    %cst = arith.constant dense<0.000000e+00> : vector<16x20xf32>
    %3 = tpu.matmul %1, %2, %cst {dimension_numbers = #tpu.dot_dimension_numbers<[1], [0], [0], [1], [0, 0, 1, 1], [], []>} : vector<16x128xbf16>, vector<128x20xbf16>, vector<16x20xf32> -> vector<16x20xf32>
    %c0_3 = arith.constant 0 : index
    %c0_4 = arith.constant 0 : index
    %4 = vector.load %arg3[%c0_3, %c0_4] : memref<1x20xf32, #tpu.memory_space<vmem>>, vector<1x20xf32>
    %5 = vector.broadcast %4 : vector<1x20xf32> to vector<16x20xf32>
    %6 = arith.addf %3, %5 : vector<16x20xf32>
    %7 = vector.extract_strided_slice %6 {offsets = [0, 0], sizes = [16, 4], strides = [1, 1]} : vector<16x20xf32> to vector<16x4xf32>
    %8 = vector.extract_strided_slice %6 {offsets = [0, 4], sizes = [16, 16], strides = [1, 1]} : vector<16x20xf32> to vector<16x16xf32>
    %cst_5 = arith.constant dense<0xFF800000> : vector<16xf32>
    %9 = vector.multi_reduction <maximumf>, %7, %cst_5 [1] : vector<16x4xf32> to vector<16xf32>
    %10 = vector.shape_cast %9 : vector<16xf32> to vector<16x1xf32>
    %11 = vector.broadcast %10 : vector<16x1xf32> to vector<16x4xf32>
    %12 = arith.subf %7, %11 : vector<16x4xf32>
    %13 = math.exp %12 : vector<16x4xf32>
    %cst_6 = arith.constant dense<0.000000e+00> : vector<16xf32>
    %14 = vector.multi_reduction <add>, %13, %cst_6 [1] : vector<16x4xf32> to vector<16xf32>
    %15 = vector.shape_cast %14 : vector<16xf32> to vector<16x1xf32>
    %16 = tpu.reciprocal %15 {approx = true} : vector<16x1xf32> -> vector<16x1xf32>
    %17 = vector.broadcast %16 : vector<16x1xf32> to vector<16x4xf32>
    %18 = arith.mulf %13, %17 : vector<16x4xf32>
    %c0_7 = arith.constant 0 : index
    %c0_8 = arith.constant 0 : index
    %19 = vector.load %arg4[%c0_7, %c0_8] : memref<16x4xf32, #tpu.memory_space<vmem>>, vector<16x4xf32>
    tpu.vector_store %arg4[%c0_7, %c0_8], %18 {strides = array<i32>} : memref<16x4xf32, #tpu.memory_space<vmem>>, vector<16x4xf32>,
    %c0_9 = arith.constant 0 : index
    %c0_10 = arith.constant 0 : index
    %20 = vector.load %arg5[%c0_9, %c0_10] : memref<16x16xf32, #tpu.memory_space<vmem>>, vector<16x16xf32>
    tpu.vector_store %arg5[%c0_9, %c0_10], %8 {strides = array<i32>} : memref<16x16xf32, #tpu.memory_space<vmem>>, vector<16x16xf32>,
    return
  }
  func.func @transform_0(%arg0: i32) -> (i32, i32) {
    %c0_i32 = arith.constant 0 : i32
    %c0_i32_0 = arith.constant 0 : i32
    return %arg0, %c0_i32 : i32, i32
  }
  func.func @transform_1(%arg0: i32) -> (i32, i32) {
    %c0_i32 = arith.constant 0 : i32
    %c0_i32_0 = arith.constant 0 : i32
    %c0_i32_1 = arith.constant 0 : i32
    return %c0_i32, %c0_i32_0 : i32, i32
  }
  func.func @transform_2(%arg0: i32) -> (i32, i32) {
    %c0_i32 = arith.constant 0 : i32
    %c0_i32_0 = arith.constant 0 : i32
    %c0_i32_1 = arith.constant 0 : i32
    return %c0_i32, %c0_i32_0 : i32, i32
  }
  func.func @transform_3(%arg0: i32) -> (i32, i32) {
    %c0_i32 = arith.constant 0 : i32
    %c0_i32_0 = arith.constant 0 : i32
    return %arg0, %c0_i32 : i32, i32
  }
  func.func @transform_4(%arg0: i32) -> (i32, i32) {
    %c0_i32 = arith.constant 0 : i32
    %c0_i32_0 = arith.constant 0 : i32
    return %arg0, %c0_i32 : i32, i32
  }
}

</mosaic_0001>

<bundles_post_ra>
// kernel: faster_rcnn_forward.3
= control target key start
LH: loop header
LB: loop body
LE: loop exit
PB: predicated region body
PF: predicated region fallthrough
CT: control target
= control target key end

     0   :  { %v543_v0 = vmov 0   ;;  %v544_v17 = vmov 1   ;;  %v545_v18 = vmov 2   ;;  %v111_v43 = vlaneseq  ;;  %s779_s0 = inlined_call_operand.vmem [shape: f32[128,3], index: 0, kind: input, shape index: {}]   ;;  %s780_s1 = inlined_call_operand.vmem [shape: f32[3,128], index: 1, kind: input, shape index: {}]   ;;  %s781_s2 = inlined_call_operand.vmem [shape: f32[1,128], index: 2, kind: input, shape index: {}]   ;;  %s782_s3 = inlined_call_operand.vmem [shape: bf16[128,128], index: 3, kind: output, shape index: {}]  }
   0x1   :  { %538 = vset.pattern.permute.xlu1 %v543_v0  ;;  %537 = vset.pattern.permute.xlu0 %v543_v0  ;;  %v16_v1 = vld [vmem:[%s779_s0 + $0x10] sm:$0xff]  ;;  %v14_v2 = vld [vmem:[%s779_s0] sm:$0xff]  ;;  %v17_v3 = vld [vmem:[%s779_s0 + $0x18] sm:$0xff] }
   0x2   :  { %43 = vperm.xlu1 %538, %v16_v1   ;;  %33 = vperm.xlu0 %537, %v14_v2   ;;  %v15_v4 = vld [vmem:[%s779_s0 + $0x8] sm:$0xff]  ;;  %v18_v6 = vld [vmem:[%s779_s0 + $0x20] sm:$0xff]  ;;  %v21_v7 = vld [vmem:[%s779_s0 + $0x38] sm:$0xff]  ;;  %v112_v46 = vshrl.u32 %v111_v43, 7 }
   0x3   :  { %v19_v5 = vld [vmem:[%s779_s0 + $0x28] sm:$0xff]  ;;  %v20_v8 = vld [vmem:[%s779_s0 + $0x30] sm:$0xff]  ;;  %v22_v10 = vld [vmem:[%s779_s0 + $0x40] sm:$0xff] }
   0x4   :  { %v23_v9 = vld [vmem:[%s779_s0 + $0x48] sm:$0xff]  ;;  %v25_v11 = vld [vmem:[%s779_s0 + $0x58] sm:$0xff]  ;;  %v24_v12 = vld [vmem:[%s779_s0 + $0x50] sm:$0xff]  ;;  %v197_v49 = vsub.s32 1, %v112_v46  ;;  %v113_v53 = vsub.s32 0, %v112_v46  ;;  %v297_v55 = vsub.s32 2, %v112_v46 }
   0x5   :  { %v27_v13 = vld [vmem:[%s779_s0 + $0x68] sm:$0xff]  ;;  %v26_v14 = vld [vmem:[%s779_s0 + $0x60] sm:$0xff]  ;;  %v29_v15 = vld [vmem:[%s779_s0 + $0x78] sm:$0xff] }
   0x6   :  { %48 = vperm.xlu1 %538, %v17_v3   ;;  %38 = vperm.xlu0 %537, %v15_v4   ;;  %v28_v16 = vld [vmem:[%s779_s0 + $0x70] sm:$0xff]  ;;  %v30_v50 = vld [vmem:[%s780_s1] sm:$0x7] }
   0x7   :  { %v655_v54 = vrot.slane %v30_v50, %v197_v49  ;;  %v661_v58 = vrot.slane %v30_v50, %v113_v53  ;;  %v665_v61 = vrot.slane %v30_v50, %v297_v55 }
   0xa   :  { %58 = vperm.xlu1 %538, %v19_v5   ;;  %53 = vperm.xlu0 %537, %v18_v6  }
   0xe   :  { %68 = vperm.xlu1 %538, %v21_v7   ;;  %63 = vperm.xlu0 %537, %v20_v8  }
  0x12   :  { %78 = vperm.xlu1 %538, %v23_v9   ;;  %73 = vperm.xlu0 %537, %v22_v10  }
  0x16   :  { %88 = vperm.xlu1 %538, %v25_v11   ;;  %83 = vperm.xlu0 %537, %v24_v12  }
  0x1a   :  { %98 = vperm.xlu1 %538, %v27_v13   ;;  %93 = vperm.xlu0 %537, %v26_v14  }
  0x1e   :  { %108 = vperm.xlu1 %538, %v29_v15   ;;  %103 = vperm.xlu0 %537, %v28_v16  }
  0x22   :  { %540 = vset.pattern.permute.xlu1 %v544_v17  ;;  %539 = vset.pattern.permute.xlu0 %v544_v17 }
  0x23   :  { %136 = vperm.xlu1 %540, %v15_v4   ;;  %132 = vperm.xlu0 %539, %v14_v2  }
  0x27   :  { %140 = vperm.xlu1 %540, %v16_v1   ;;  %144 = vperm.xlu0 %539, %v17_v3  }
  0x2b   :  { %148 = vperm.xlu1 %540, %v18_v6   ;;  %152 = vperm.xlu0 %539, %v19_v5  }
  0x2f   :  { %156 = vperm.xlu1 %540, %v20_v8   ;;  %160 = vperm.xlu0 %539, %v21_v7  }
  0x33   :  { %164 = vperm.xlu1 %540, %v22_v10   ;;  %168 = vperm.xlu0 %539, %v23_v9  }
  0x37   :  { %172 = vperm.xlu1 %540, %v24_v12   ;;  %176 = vperm.xlu0 %539, %v25_v11  }
  0x3b   :  { %180 = vperm.xlu1 %540, %v26_v14   ;;  %184 = vperm.xlu0 %539, %v27_v13  }
  0x3f   :  { %188 = vperm.xlu1 %540, %v28_v16   ;;  %192 = vperm.xlu0 %539, %v29_v15  }
  0x43   :  { %541 = vset.pattern.permute.xlu1 %v545_v18  ;;  %542 = vset.pattern.permute.xlu0 %v545_v18 }
  0x44   :  { %232 = vperm.xlu1 %541, %v14_v2   ;;  %236 = vperm.xlu0 %542, %v15_v4  }
  0x48   :  { %240 = vperm.xlu1 %541, %v16_v1   ;;  %248 = vperm.xlu0 %542, %v18_v6  }
  0x4c   :  { %244 = vperm.xlu1 %541, %v17_v3   ;;  %256 = vperm.xlu0 %542, %v20_v8  }
  0x50   :  { %252 = vperm.xlu1 %541, %v19_v5   ;;  %264 = vperm.xlu0 %542, %v22_v10  }
  0x54   :  { %260 = vperm.xlu1 %541, %v21_v7   ;;  %272 = vperm.xlu0 %542, %v24_v12   ;;  %v675_v7 = vld [vmem:[%s781_s2] ss:$0 sm:$0xff] }
  0x58   :  { %268 = vperm.xlu1 %541, %v23_v9   ;;  %280 = vperm.xlu0 %542, %v26_v14  }
  0x5c   :  { %276 = vperm.xlu1 %541, %v25_v11   ;;  %288 = vperm.xlu0 %542, %v28_v16  }
  0x60   :  { %284 = vperm.xlu1 %541, %v27_v13  }
  0x64   :  { %292 = vperm.xlu1 %541, %v29_v15  }
  0x81   :  { %v44_v19 = vpop.permute.xlu1 %43  ;;  %v34_v20 = vpop.permute.xlu0 %33 }
  0x82   :  { %v115_v63 = vmul.f32 %v661_v58, %v34_v20  ;;  %v117_v8 = vmul.f32 %v661_v58, %v44_v19 }
  0x85   :  { %v614_v21 = vpop.permute.xlu1 %48  ;;  %v39_v22 = vpop.permute.xlu0 %38 }
  0x86   :  { %v116_v62 = vmul.f32 %v661_v58, %v39_v22  ;;  %v118_v20 = vmul.f32 %v661_v58, %v614_v21 }
  0x89   :  { %v616_v23 = vpop.permute.xlu1 %58  ;;  %v54_v24 = vpop.permute.xlu0 %53 }
  0x8a   :  { %v119_v19 = vmul.f32 %v661_v58, %v54_v24  ;;  %v120_v21 = vmul.f32 %v661_v58, %v616_v23 }
  0x8d   :  { %v618_v25 = vpop.permute.xlu1 %68  ;;  %v620_v26 = vpop.permute.xlu0 %63 }
  0x91   :  { %v622_v27 = vpop.permute.xlu1 %78  ;;  %v624_v28 = vpop.permute.xlu0 %73 }
  0x95   :  { %v626_v29 = vpop.permute.xlu1 %88  ;;  %v628_v30 = vpop.permute.xlu0 %83 }
  0x99   :  { %v630_v31 = vpop.permute.xlu1 %98  ;;  %v632_v32 = vpop.permute.xlu0 %93 }
  0x9d   :  { %v634_v33 = vpop.permute.xlu1 %108  ;;  %v636_v34 = vpop.permute.xlu0 %103 }
  0xa2   :  { %v137_v35 = vpop.permute.xlu1 %136  ;;  %v133_v36 = vpop.permute.xlu0 %132 }
  0xa3   :  { %v200_v59 = vmul.f32 %v655_v54, %v137_v35  ;;  %v199_v60 = vmul.f32 %v655_v54, %v133_v36 }
  0xa5   :  { %v216_v0 = vadd.f32 %v200_v59, %v116_v62  ;;  %v215_v3 = vadd.f32 %v199_v60, %v115_v63  ;;  %v121_v59 = vmul.f32 %v661_v58, %v620_v26 }
  0xa6   :  { %v141_v37 = vpop.permute.xlu1 %140  ;;  %v145_v38 = vpop.permute.xlu0 %144 }
  0xa7   :  { %v201_v4 = vmul.f32 %v655_v54, %v141_v37  ;;  %v202_v11 = vmul.f32 %v655_v54, %v145_v38 }
  0xa9   :  { %v217_v15 = vadd.f32 %v201_v4, %v117_v8  ;;  %v218_v38 = vadd.f32 %v202_v11, %v118_v20  ;;  %v122_v4 = vmul.f32 %v661_v58, %v618_v25  ;;  %v125_v20 = vmul.f32 %v661_v58, %v628_v30 }
  0xaa   :  { %v149_v39 = vpop.permute.xlu1 %148  ;;  %v153_v40 = vpop.permute.xlu0 %152 }
  0xab   :  { %v203_v12 = vmul.f32 %v655_v54, %v149_v39  ;;  %v204_v49 = vmul.f32 %v655_v54, %v153_v40 }
  0xad   :  { %v219_v39 = vadd.f32 %v203_v12, %v119_v19 }
  0xae   :  { %v157_v41 = vpop.permute.xlu1 %156  ;;  %v638_v42 = vpop.permute.xlu0 %160 }
  0xaf   :  { %v205_v50 = vmul.f32 %v655_v54, %v157_v41  ;;  %v206_v41 = vmul.f32 %v655_v54, %v638_v42 }
  0xb1   :  { %v222_v11 = vadd.f32 %v206_v41, %v122_v4 }
  0xb2   :  { %v640_v44 = vpop.permute.xlu1 %164  ;;  %v642_v45 = vpop.permute.xlu0 %168 }
  0xb3   :  { %v207_v63 = vmul.f32 %v655_v54, %v640_v44  ;;  %v208_v25 = vmul.f32 %v655_v54, %v642_v45 }
  0xb6   :  { %v644_v47 = vpop.permute.xlu1 %172  ;;  %v646_v48 = vpop.permute.xlu0 %176 }
  0xba   :  { %v651_v51 = vpop.permute.xlu1 %180  ;;  %v653_v52 = vpop.permute.xlu0 %184 }
  0xbe   :  { %v657_v56 = vpop.permute.xlu1 %188  ;;  %v659_v57 = vpop.permute.xlu0 %192 }
  0xc3   :  { %v233_v1 = vpop.permute.xlu1 %232  ;;  %v237_v2 = vpop.permute.xlu0 %236 }
  0xc4   :  { %v299_v5 = vmul.f32 %v665_v61, %v233_v1  ;;  %v300_v6 = vmul.f32 %v665_v61, %v237_v2  ;;  %v220_v1 = vadd.f32 %v204_v49, %v120_v21  ;;  %v221_v2 = vadd.f32 %v205_v50, %v121_v59 }
  0xc6   :  { %v315_v9 = vadd.f32 %v299_v5, %v215_v3  ;;  %v316_v10 = vadd.f32 %v300_v6, %v216_v0  ;;  %v123_v5 = vmul.f32 %v661_v58, %v624_v28 }
  0xc7   :  { %v241_v13 = vpop.permute.xlu1 %240  ;;  %v249_v14 = vpop.permute.xlu0 %248 }
  0xc8   :  { %v338_v16 = vadd.f32 %v675_v7, %v315_v9  ;;  %v339_v17 = vadd.f32 %v675_v7, %v316_v10  ;;  %v301_v18 = vmul.f32 %v665_v61, %v241_v13  ;;  %v303_v22 = vmul.f32 %v665_v61, %v249_v14 }
  0xc9   :  { %v223_v12 = vadd.f32 %v207_v63, %v123_v5  ;;  %v209_v13 = vmul.f32 %v655_v54, %v644_v47 }
  0xca   :  { %v354_v35 = vmax.f32 %v338_v16, 0.0  ;;  %v355_v36 = vmax.f32 %v339_v17, 0.0  ;;  %v317_v37 = vadd.f32 %v301_v18, %v217_v15  ;;  %v319_v24 = vadd.f32 %v303_v22, %v219_v39 }
  0xcb   :  { %v245_v43 = vpop.permute.xlu1 %244  ;;  %v257_v46 = vpop.permute.xlu0 %256  ;;  %v124_v18 = vmul.f32 %v661_v58, %v622_v27  ;;  %v211_v27 = vmul.f32 %v655_v54, %v651_v51 }
  0xcc   :  { %v490_v53 = vpack.c.bf16 %v355_v36, %v354_v35  ;;  %v302_v55 = vmul.f32 %v665_v61, %v245_v43  ;;  %v340_v60 = vadd.f32 %v675_v7, %v317_v37  ;;  %v305_v40 = vmul.f32 %v665_v61, %v257_v46 }
  0xcd   :  { %v342_v6 = vadd.f32 %v675_v7, %v319_v24  ;;  %v225_v37 = vadd.f32 %v209_v13, %v125_v20  ;;  %v224_v43 = vadd.f32 %v208_v25, %v124_v18 }
  0xce   :  { %491 = vst [vmem:[%s782_s3] sm:$0xff] %v490_v53   ;;  %v318_v62 = vadd.f32 %v302_v55, %v218_v38  ;;  %v356_v8 = vmax.f32 %v340_v60, 0.0  ;;  %v321_v9 = vadd.f32 %v305_v40, %v221_v2  ;;  %v210_v38 = vmul.f32 %v655_v54, %v646_v48 }
  0xcf   :  { %v253_v23 = vpop.permute.xlu1 %252  ;;  %v265_v0 = vpop.permute.xlu0 %264  ;;  %v358_v47 = vmax.f32 %v342_v6, 0.0  ;;  %v126_v53 = vmul.f32 %v661_v58, %v626_v29  ;;  %v127_v55 = vmul.f32 %v661_v58, %v632_v32  ;;  %v212_v29 = vmul.f32 %v655_v54, %v653_v52 }
  0xd0   :  { %v341_v26 = vadd.f32 %v675_v7, %v318_v62  ;;  %v304_v3 = vmul.f32 %v665_v61, %v253_v23  ;;  %v307_v42 = vmul.f32 %v665_v61, %v265_v0  ;;  %v344_v45 = vadd.f32 %v675_v7, %v321_v9 }
  0xd1   :  { %v226_v62 = vadd.f32 %v210_v38, %v126_v53  ;;  %v227_v40 = vadd.f32 %v211_v27, %v127_v55  ;;  %v213_v32 = vmul.f32 %v655_v54, %v657_v56  ;;  %v128_v2 = vmul.f32 %v661_v58, %v630_v31 }
  0xd2   :  { %v357_v44 = vmax.f32 %v341_v26, 0.0  ;;  %v320_v10 = vadd.f32 %v304_v3, %v220_v1  ;;  %v323_v19 = vadd.f32 %v307_v42, %v223_v12  ;;  %v360_v24 = vmax.f32 %v344_v45, 0.0 }
  0xd3   :  { %v261_v14 = vpop.permute.xlu1 %260  ;;  %v273_v15 = vpop.permute.xlu0 %272  ;;  %v129_v26 = vmul.f32 %v661_v58, %v636_v34  ;;  %v228_v42 = vadd.f32 %v212_v29, %v128_v2 }
  0xd4   :  { %v495_v16 = vpack.c.bf16 %v357_v44, %v356_v8  ;;  %v343_v28 = vadd.f32 %v675_v7, %v320_v10  ;;  %v306_v17 = vmul.f32 %v665_v61, %v261_v14  ;;  %v309_v22 = vmul.f32 %v665_v61, %v273_v15 }
  0xd5   :  { %v346_v21 = vadd.f32 %v675_v7, %v323_v19  ;;  %v214_v8 = vmul.f32 %v655_v54, %v659_v57  ;;  %v229_v44 = vadd.f32 %v213_v32, %v129_v26 }
  0xd6   :  { %527 = vst [vmem:[%s782_s3 + $0x8] sm:$0xff] %v495_v16   ;;  %v359_v35 = vmax.f32 %v343_v28, 0.0  ;;  %v322_v36 = vadd.f32 %v306_v17, %v222_v11  ;;  %v325_v48 = vadd.f32 %v309_v22, %v225_v37  ;;  %v130_v11 = vmul.f32 %v661_v58, %v634_v33 }
  0xd7   :  { %v269_v30 = vpop.permute.xlu1 %268  ;;  %v281_v39 = vpop.permute.xlu0 %280  ;;  %v362_v3 = vmax.f32 %v346_v21, 0.0 }
  0xd8   :  { %v500_v46 = vpack.c.bf16 %v359_v35, %v358_v47  ;;  %v345_v49 = vadd.f32 %v675_v7, %v322_v36  ;;  %v308_v50 = vmul.f32 %v665_v61, %v269_v30  ;;  %v311_v60 = vmul.f32 %v665_v61, %v281_v39 }
  0xd9   :  { %v348_v4 = vadd.f32 %v675_v7, %v325_v48  ;;  %v230_v25 = vadd.f32 %v214_v8, %v130_v11 }
  0xda   :  { %528 = vst [vmem:[%s782_s3 + $0x10] sm:$0xff] %v500_v46   ;;  %v361_v51 = vmax.f32 %v345_v49, 0.0  ;;  %v324_v59 = vadd.f32 %v308_v50, %v224_v43  ;;  %v327_v56 = vadd.f32 %v311_v60, %v227_v40 }
  0xdb   :  { %v277_v41 = vpop.permute.xlu1 %276  ;;  %v289_v63 = vpop.permute.xlu0 %288  ;;  %v364_v12 = vmax.f32 %v348_v4, 0.0 }
  0xdc   :  { %v505_v23 = vpack.c.bf16 %v361_v51, %v360_v24  ;;  %v347_v0 = vadd.f32 %v675_v7, %v324_v59  ;;  %v310_v1 = vmul.f32 %v665_v61, %v277_v41  ;;  %v313_v6 = vmul.f32 %v665_v61, %v289_v63 }
  0xdd   :  { %v350_v13 = vadd.f32 %v675_v7, %v327_v56 }
  0xde   :  { %529 = vst [vmem:[%s782_s3 + $0x18] sm:$0xff] %v505_v23   ;;  %v363_v52 = vmax.f32 %v347_v0, 0.0  ;;  %v326_v5 = vadd.f32 %v310_v1, %v226_v62  ;;  %v329_v15 = vadd.f32 %v313_v6, %v229_v44 }
  0xdf   :  { %v285_v31 = vpop.permute.xlu1 %284  ;;  %v366_v18 = vmax.f32 %v350_v13, 0.0 }
  0xe0   :  { %v510_v9 = vpack.c.bf16 %v363_v52, %v362_v3  ;;  %v349_v34 = vadd.f32 %v675_v7, %v326_v5  ;;  %v312_v10 = vmul.f32 %v665_v61, %v285_v31  ;;  %v352_v33 = vadd.f32 %v675_v7, %v329_v15 }
  0xe2   :  { %530 = vst [vmem:[%s782_s3 + $0x20] sm:$0xff] %v510_v9   ;;  %v365_v14 = vmax.f32 %v349_v34, 0.0  ;;  %v328_v54 = vadd.f32 %v312_v10, %v228_v42  ;;  %v368_v47 = vmax.f32 %v352_v33, 0.0 }
  0xe3   :  { %v293_v57 = vpop.permute.xlu1 %292 }
  0xe4   :  { %v515_v16 = vpack.c.bf16 %v365_v14, %v364_v12  ;;  %v351_v28 = vadd.f32 %v675_v7, %v328_v54  ;;  %v314_v17 = vmul.f32 %v665_v61, %v293_v57 }
  0xe6   :  { %531 = vst [vmem:[%s782_s3 + $0x28] sm:$0xff] %v515_v16   ;;  %v367_v58 = vmax.f32 %v351_v28, 0.0  ;;  %v330_v20 = vadd.f32 %v314_v17, %v230_v25 }
  0xe8   :  { %v520_v19 = vpack.c.bf16 %v367_v58, %v366_v18  ;;  %v353_v22 = vadd.f32 %v675_v7, %v330_v20 }
  0xea   :  { %532 = vst [vmem:[%s782_s3 + $0x30] sm:$0xff] %v520_v19   ;;  %v369_v45 = vmax.f32 %v353_v22, 0.0 }
  0xec   :  { %v525_v35 = vpack.c.bf16 %v369_v45, %v368_v47 }
  0xee   :  { %533 = vst [vmem:[%s782_s3 + $0x38] sm:$0xff] %v525_v35  }

// kernel: faster_rcnn_forward.4
= control target key start
LH: loop header
LB: loop body
LE: loop exit
PB: predicated region body
PF: predicated region fallthrough
CT: control target
= control target key end

     0   :  { %s886_s1 = inlined_call_operand.vmem [shape: bf16[128,128], index: 1, kind: input, shape index: {}]   ;;  %s887_s0 = inlined_call_operand.vmem [shape: bf16[128,128], index: 0, kind: input, shape index: {}]   ;;  %s888_s3 = inlined_call_operand.vmem [shape: bf16[128,128], index: 3, kind: input, shape index: {}]   ;;  %s889_s2 = inlined_call_operand.vmem [shape: f32[1,128], index: 2, kind: input, shape index: {}]   ;;  %s890_s4 = inlined_call_operand.vmem [shape: f32[1,128], index: 4, kind: input, shape index: {}]   ;;  %s891_s5 = inlined_call_operand.vmem [shape: bf16[128,128], index: 5, kind: output, shape index: {}]  }
   0x1   :  { %v730_v0 = vld [vmem:[%s886_s1] sm:$0xff]   ;;  %v731_v1 = vld [vmem:[%s886_s1 + $0x8] sm:$0xff]   ;;  %v732_v2 = vld [vmem:[%s886_s1 + $0x10] sm:$0xff]  }
   0x2   :  { %666 = vmatprep.subr.bf16.mxu0 %v730_v0  ;;  %v733_v3 = vld [vmem:[%s886_s1 + $0x18] sm:$0xff]   ;;  %v738_v4 = vld [vmem:[%s887_s0] sm:$0xff]   ;;  %v735_v6 = vld [vmem:[%s886_s1 + $0x28] sm:$0xff]  }
   0x3   :  { %667 = vmatpush3.bf16.msra.mxu0 %v730_v0  ;;  %682 = vmatprep.mubr.bf16.mxu0 %v738_v4  ;;  %v734_v5 = vld [vmem:[%s886_s1 + $0x20] sm:$0xff]   ;;  %v747_v8 = vld [vmem:[%s888_s3 + $0x8] sm:$0xff]   ;;  %v736_v9 = vld [vmem:[%s886_s1 + $0x30] sm:$0xff]  }
   0x4   :  { %668 = vmatprep.subr.bf16.mxu0 %v731_v1  ;;  %v746_v7 = vld [vmem:[%s888_s3] sm:$0xff]   ;;  %v748_v10 = vld [vmem:[%s888_s3 + $0x10] sm:$0xff]   ;;  %v737_v11 = vld [vmem:[%s886_s1 + $0x38] sm:$0xff]  }
   0x5   :  { %698 = vmatprep.subr.bf16.mxu1 %v746_v7  ;;  %v749_v12 = vld [vmem:[%s888_s3 + $0x18] sm:$0xff]   ;;  %v750_v13 = vld [vmem:[%s888_s3 + $0x20] sm:$0xff]   ;;  %v739_v14 = vld [vmem:[%s887_s0 + $0x8] sm:$0xff]  }
   0x6   :  { %699 = vmatpush3.bf16.msra.mxu1 %v746_v7  ;;  %v740_v15 = vld [vmem:[%s887_s0 + $0x10] sm:$0xff]   ;;  %v751_v16 = vld [vmem:[%s888_s3 + $0x28] sm:$0xff]   ;;  %v741_v17 = vld [vmem:[%s887_s0 + $0x18] sm:$0xff]  }
   0x7   :  { %669 = vmatpush3.bf16.msra.mxu0 %v731_v1  ;;  %700 = vmatprep.subr.bf16.mxu1 %v747_v8  ;;  %v742_v18 = vld [vmem:[%s887_s0 + $0x20] sm:$0xff]   ;;  %v743_v19 = vld [vmem:[%s887_s0 + $0x28] sm:$0xff]   ;;  %v744_v20 = vld [vmem:[%s887_s0 + $0x30] sm:$0xff]  }
   0x8   :  { %670 = vmatprep.subr.bf16.mxu0 %v732_v2  ;;  %v745_v21 = vld [vmem:[%s887_s0 + $0x38] sm:$0xff]   ;;  %v752_v22 = vld [vmem:[%s888_s3 + $0x30] sm:$0xff]   ;;  %v529_v24 = vld [vmem:[%s889_s2] ss:$0 sm:$0xff] }
   0x9   :  { %v753_v23 = vld [vmem:[%s888_s3 + $0x38] sm:$0xff]  }
   0xa   :  { %701 = vmatpush3.bf16.msra.mxu1 %v747_v8 }
   0xb   :  { %671 = vmatpush3.bf16.msra.mxu0 %v732_v2  ;;  %702 = vmatprep.subr.bf16.mxu1 %v748_v10 }
   0xc   :  { %672 = vmatprep.subr.bf16.mxu0 %v733_v3 }
   0xe   :  { %703 = vmatpush3.bf16.msra.mxu1 %v748_v10 }
   0xf   :  { %673 = vmatpush3.bf16.msra.mxu0 %v733_v3  ;;  %704 = vmatprep.subr.bf16.mxu1 %v749_v12 }
  0x10   :  { %674 = vmatprep.subr.bf16.mxu0 %v734_v5 }
  0x12   :  { %705 = vmatpush3.bf16.msra.mxu1 %v749_v12 }
  0x13   :  { %675 = vmatpush3.bf16.msra.mxu0 %v734_v5  ;;  %706 = vmatprep.subr.bf16.mxu1 %v750_v13 }
  0x14   :  { %676 = vmatprep.subr.bf16.mxu0 %v735_v6 }
  0x16   :  { %707 = vmatpush3.bf16.msra.mxu1 %v750_v13 }
  0x17   :  { %677 = vmatpush3.bf16.msra.mxu0 %v735_v6  ;;  %708 = vmatprep.subr.bf16.mxu1 %v751_v16 }
  0x18   :  { %678 = vmatprep.subr.bf16.mxu0 %v736_v9 }
  0x1a   :  { %709 = vmatpush3.bf16.msra.mxu1 %v751_v16 }
  0x1b   :  { %679 = vmatpush3.bf16.msra.mxu0 %v736_v9  ;;  %710 = vmatprep.subr.bf16.mxu1 %v752_v22 }
  0x1c   :  { %680 = vmatprep.subr.bf16.mxu0 %v737_v11 }
  0x1e   :  { %711 = vmatpush3.bf16.msra.mxu1 %v752_v22 }
  0x1f   :  { %681 = vmatpush3.bf16.msra.mxu0 %v737_v11  ;;  %712 = vmatprep.subr.bf16.mxu1 %v753_v23 }
  0x22   :  { %683 = vmatmul.mubr.bf16.vlgmr.msra.gmra.mrb[0].mxu0 %v739_v14  ;;  %713 = vmatpush3.bf16.msra.mxu1 %v753_v23 }
  0x23   :  { %686 = vmatprep.mubr.bf16.mxu0 %v740_v15 }
  0x2a   :  { %687 = vmatmul.mubr.bf16.gmra.mrb[4].mxu0 %v741_v17 }
  0x2b   :  { %690 = vmatprep.mubr.bf16.mxu0 %v742_v18  ;;  %v546_v18 = vld [vmem:[%s890_s4] ss:$0 sm:$0xff] }
  0x32   :  { %691 = vmatmul.mubr.bf16.gmra.mrb[8].mxu0 %v743_v19 }
  0x33   :  { %694 = vmatprep.mubr.bf16.mxu0 %v744_v20 }
  0x3a   :  { %695 = vmatmul.mubr.bf16.gmra.mrb[12].mxu0 %v745_v21 }
  0xf5   :  { %v684_v25 = vpop.f32.mrb[0].mxu0 }
  0xf6   :  { %v199_v26 = vadd.f32 %v684_v25, %v529_v24  ;;  %v190_v27 = vpop.f32.mrb[1].mxu0 }
  0xf7   :  { %v191_v28 = vadd.f32 %v529_v24, %v190_v27  ;;  %v685_v29 = vpop.f32.mrb[2].mxu0 }
  0xf8   :  { %v202_v30 = vadd.f32 %v685_v29, %v529_v24  ;;  %v193_v31 = vpop.f32.mrb[3].mxu0  ;;  %v255_v33 = vmax.f32 %v199_v26, 0.0 }
  0xf9   :  { %v194_v32 = vadd.f32 %v529_v24, %v193_v31  ;;  %v253_v35 = vmax.f32 %v191_v28, 0.0 }
  0xfa   :  { %v256_v34 = vmax.f32 %v202_v30, 0.0 }
  0xfb   :  { %v254_v36 = vmax.f32 %v194_v32, 0.0 }
  0xfc   :  { %v270_v37 = vpack.c.bf16 %v256_v34, %v255_v33 }
  0xfd   :  { %v688_v38 = vpop.f32.mrb[4].mxu0  ;;  %v269_v39 = vpack.c.bf16 %v254_v36, %v253_v35 }
  0xfe   :  { %v215_v40 = vadd.f32 %v688_v38, %v529_v24  ;;  %v206_v41 = vpop.f32.mrb[5].mxu0 }
  0xff   :  { %v207_v42 = vadd.f32 %v529_v24, %v206_v41  ;;  %v689_v43 = vpop.f32.mrb[6].mxu0  ;;  %714 = vmatprep.mubr.bf16.mxu1 %v269_v39 }
 0x100   :  { %v218_v44 = vadd.f32 %v689_v43, %v529_v24  ;;  %v209_v45 = vpop.f32.mrb[7].mxu0  ;;  %715 = vmatmul.mubr.bf16.vlgmr.msra.gmra.mrb[0].mxu1 %v270_v37  ;;  %v259_v47 = vmax.f32 %v215_v40, 0.0 }
 0x101   :  { %v210_v46 = vadd.f32 %v529_v24, %v209_v45  ;;  %v257_v49 = vmax.f32 %v207_v42, 0.0 }
 0x102   :  { %v260_v48 = vmax.f32 %v218_v44, 0.0 }
 0x103   :  { %v258_v50 = vmax.f32 %v210_v46, 0.0 }
 0x104   :  { %v272_v51 = vpack.c.bf16 %v260_v48, %v259_v47 }
 0x105   :  { %v271_v52 = vpack.c.bf16 %v258_v50, %v257_v49  ;;  %v692_v53 = vpop.f32.mrb[8].mxu0 }
 0x106   :  { %v231_v54 = vadd.f32 %v692_v53, %v529_v24  ;;  %v222_v55 = vpop.f32.mrb[9].mxu0 }
 0x107   :  { %v223_v56 = vadd.f32 %v529_v24, %v222_v55  ;;  %v693_v57 = vpop.f32.mrb[10].mxu0  ;;  %718 = vmatprep.mubr.bf16.mxu1 %v271_v52 }
 0x108   :  { %v234_v58 = vadd.f32 %v693_v57, %v529_v24  ;;  %v225_v59 = vpop.f32.mrb[11].mxu0  ;;  %719 = vmatmul.mubr.bf16.gmra.mrb[4].mxu1 %v272_v51  ;;  %v263_v61 = vmax.f32 %v231_v54, 0.0 }
 0x109   :  { %v226_v60 = vadd.f32 %v529_v24, %v225_v59  ;;  %v261_v63 = vmax.f32 %v223_v56, 0.0 }
 0x10a   :  { %v264_v62 = vmax.f32 %v234_v58, 0.0 }
 0x10b   :  { %v262_v0 = vmax.f32 %v226_v60, 0.0 }
 0x10c   :  { %v274_v1 = vpack.c.bf16 %v264_v62, %v263_v61 }
 0x10d   :  { %v273_v2 = vpack.c.bf16 %v262_v0, %v261_v63  ;;  %v696_v3 = vpop.f32.mrb[12].mxu0 }
 0x10e   :  { %v247_v4 = vadd.f32 %v696_v3, %v529_v24  ;;  %v238_v5 = vpop.f32.mrb[13].mxu0 }
 0x10f   :  { %v239_v6 = vadd.f32 %v529_v24, %v238_v5  ;;  %v697_v7 = vpop.f32.mrb[14].mxu0  ;;  %722 = vmatprep.mubr.bf16.mxu1 %v273_v2 }
 0x110   :  { %v250_v8 = vadd.f32 %v697_v7, %v529_v24  ;;  %v241_v9 = vpop.f32.mrb[15].mxu0  ;;  %723 = vmatmul.mubr.bf16.gmra.mrb[8].mxu1 %v274_v1  ;;  %v267_v11 = vmax.f32 %v247_v4, 0.0 }
 0x111   :  { %v242_v10 = vadd.f32 %v529_v24, %v241_v9  ;;  %v265_v13 = vmax.f32 %v239_v6, 0.0 }
 0x112   :  { %v268_v12 = vmax.f32 %v250_v8, 0.0 }
 0x113   :  { %v266_v14 = vmax.f32 %v242_v10, 0.0 }
 0x114   :  { %v276_v15 = vpack.c.bf16 %v268_v12, %v267_v11 }
 0x115   :  { %v275_v16 = vpack.c.bf16 %v266_v14, %v265_v13 }
 0x117   :  { %726 = vmatprep.mubr.bf16.mxu1 %v275_v16 }
 0x118   :  { %727 = vmatmul.mubr.bf16.gmra.mrb[12].mxu1 %v276_v15 }
 0x1d3   :  { %v716_v17 = vpop.f32.mrb[0].mxu1 }
 0x1d4   :  { %v382_v19 = vpop.f32.mrb[1].mxu1  ;;  %v391_v21 = vadd.f32 %v716_v17, %v546_v18 }
 0x1d5   :  { %v717_v20 = vpop.f32.mrb[2].mxu1  ;;  %v383_v25 = vadd.f32 %v546_v18, %v382_v19 }
 0x1d6   :  { %v394_v22 = vadd.f32 %v717_v20, %v546_v18  ;;  %v385_v23 = vpop.f32.mrb[3].mxu1 }
 0x1d7   :  { %v386_v24 = vadd.f32 %v546_v18, %v385_v23 }
 0x1d8   :  { %v595_v26 = vpack.c.bf16 %v394_v22, %v391_v21 }
 0x1d9   :  { %v590_v27 = vpack.c.bf16 %v386_v24, %v383_v25 }
 0x1da   :  { %627 = vst [vmem:[%s891_s5 + $0x8] sm:$0xff] %v595_v26  }
 0x1db   :  { %591 = vst [vmem:[%s891_s5] sm:$0xff] %v590_v27   ;;  %v720_v28 = vpop.f32.mrb[4].mxu1 }
 0x1dc   :  { %v398_v29 = vpop.f32.mrb[5].mxu1  ;;  %v407_v31 = vadd.f32 %v720_v28, %v546_v18 }
 0x1dd   :  { %v721_v30 = vpop.f32.mrb[6].mxu1  ;;  %v399_v34 = vadd.f32 %v546_v18, %v398_v29 }
 0x1de   :  { %v410_v32 = vadd.f32 %v721_v30, %v546_v18  ;;  %v401_v33 = vpop.f32.mrb[7].mxu1 }
 0x1df   :  { %v402_v35 = vadd.f32 %v546_v18, %v401_v33 }
 0x1e0   :  { %v605_v36 = vpack.c.bf16 %v410_v32, %v407_v31 }
 0x1e1   :  { %v600_v37 = vpack.c.bf16 %v402_v35, %v399_v34 }
 0x1e2   :  { %629 = vst [vmem:[%s891_s5 + $0x18] sm:$0xff] %v605_v36  }
 0x1e3   :  { %628 = vst [vmem:[%s891_s5 + $0x10] sm:$0xff] %v600_v37   ;;  %v724_v38 = vpop.f32.mrb[8].mxu1 }
 0x1e4   :  { %v414_v39 = vpop.f32.mrb[9].mxu1  ;;  %v423_v41 = vadd.f32 %v724_v38, %v546_v18 }
 0x1e5   :  { %v725_v40 = vpop.f32.mrb[10].mxu1  ;;  %v415_v44 = vadd.f32 %v546_v18, %v414_v39 }
 0x1e6   :  { %v426_v42 = vadd.f32 %v725_v40, %v546_v18  ;;  %v417_v43 = vpop.f32.mrb[11].mxu1 }
 0x1e7   :  { %v418_v45 = vadd.f32 %v546_v18, %v417_v43 }
 0x1e8   :  { %v615_v46 = vpack.c.bf16 %v426_v42, %v423_v41 }
 0x1e9   :  { %v610_v47 = vpack.c.bf16 %v418_v45, %v415_v44 }
 0x1ea   :  { %631 = vst [vmem:[%s891_s5 + $0x28] sm:$0xff] %v615_v46  }
 0x1eb   :  { %630 = vst [vmem:[%s891_s5 + $0x20] sm:$0xff] %v610_v47   ;;  %v728_v48 = vpop.f32.mrb[12].mxu1 }
 0x1ec   :  { %v430_v49 = vpop.f32.mrb[13].mxu1  ;;  %v439_v51 = vadd.f32 %v728_v48, %v546_v18 }
 0x1ed   :  { %v729_v50 = vpop.f32.mrb[14].mxu1  ;;  %v431_v54 = vadd.f32 %v546_v18, %v430_v49 }
 0x1ee   :  { %v442_v52 = vadd.f32 %v729_v50, %v546_v18  ;;  %v433_v53 = vpop.f32.mrb[15].mxu1 }
 0x1ef   :  { %v434_v55 = vadd.f32 %v546_v18, %v433_v53 }
 0x1f0   :  { %v625_v56 = vpack.c.bf16 %v442_v52, %v439_v51 }
 0x1f1   :  { %v620_v57 = vpack.c.bf16 %v434_v55, %v431_v54 }
 0x1f2   :  { %633 = vst [vmem:[%s891_s5 + $0x38] sm:$0xff] %v625_v56  }
 0x1f3   :  { %632 = vst [vmem:[%s891_s5 + $0x30] sm:$0xff] %v620_v57  }

// kernel: faster_rcnn_forward.5
= control target key start
LH: loop header
LB: loop body
LE: loop exit
PB: predicated region body
PF: predicated region fallthrough
CT: control target
= control target key end

     0   :  { %v273_v1 = vmov 0.0   ;;  %vm274_vm0 = vmmov 0   ;;  %s363_s0 = inlined_call_operand.vmem [shape: f32[16,128], index: 0, kind: input, shape index: {}]   ;;  %s364_s1 = inlined_call_operand.vmem [shape: bf16[128,20], index: 1, kind: input, shape index: {}]   ;;  %s365_s2 = inlined_call_operand.vmem [shape: f32[1,20], index: 2, kind: input, shape index: {}]   ;;  %s366_s3 = inlined_call_operand.vmem [shape: f32[16,4], index: 3, kind: output, shape index: {0}]   ;;  %s367_s4 = inlined_call_operand.hbm [shape: f32[16,16], index: 4, kind: output, shape index: {1}]  }
   0x1   :  { %v233_v0 = vld [vmem:[%s364_s1] sm:$0xff]   ;;  %207 = vmatprep.subr.bf16.mxu0 %v273_v1  ;;  %v234_v2 = vld [vmem:[%s364_s1 + $0x8] sm:$0xff]   ;;  %223 = vmatprep.mubr.msk.bf16.mxu0 %vm274_vm0, %v273_v1  ;;  %v235_v3 = vld [vmem:[%s364_s1 + $0x10] sm:$0xff]  }
   0x2   :  { %208 = vmatpush3.bf16.msra.mxu0 %v233_v0 }
   0x3   :  { %209 = vmatprep.subr.bf16.mxu0 %v273_v1 }
   0x6   :  { %210 = vmatpush3.bf16.msra.mxu0 %v234_v2 }
   0x7   :  { %211 = vmatprep.subr.bf16.mxu0 %v273_v1 }
   0x8   :  { %10 = vsyncpa [#allocation3], 0  ;;  %v236_v4 = vld [vmem:[%s364_s1 + $0x18] sm:$0xff]   ;;  %v237_v5 = vld [vmem:[%s364_s1 + $0x20] sm:$0xff]   ;;  %vm133_vm1 = vcmask 31744   ;;  %vm166_vm2 = vcmask 130048  }
   0x9   :  { %v238_v6 = vld [vmem:[%s364_s1 + $0x28] sm:$0xff]   ;;  %v239_v7 = vld [vmem:[%s364_s1 + $0x30] sm:$0xff]   ;;  %v240_v8 = vld [vmem:[%s364_s1 + $0x38] sm:$0xff]   ;;  %s276_s1 = smov [#allocation2]  }
   0xa   :  { %212 = vmatpush3.bf16.msra.mxu0 %v235_v3  ;;  %v18_v9 = vld [vmem:[%s363_s0] sm:$0xff]  ;;  %v19_v10 = vld [vmem:[%s363_s0 + $0x8] sm:$0xff]  ;;  %s275_s0 = smov 124  }
   0xb   :  { %213 = vmatprep.subr.bf16.mxu0 %v273_v1  ;;  %v20_v11 = vpack.c.bf16 %v19_v10, %v18_v9  ;;  %v189_v12 = vld [vmem:[%s365_s2] ss:$0 sm:$0xff]  ;;  %s176_s2 = sshll.u32 %s276_s1, 4  ;;  %s177_s2 = int_to_ptr.vmem [resolvable:$true] %s176_s2 }
   0xc   :  { %s249_s11 = scalar_lea.vmem %s177_s2, 256  ;;  %p254_p1 = scmp.lt.s32.totalorder %s177_s2, %s177_s2 }
   0xd   :  { %p250_p0 = scmp.ne.s32.totalorder %s177_s2, %s249_s11  ;;  %p255_p2 = scmp.lt.s32.totalorder %s249_s11, %s249_s11 }
   0xe   :  { %214 = vmatpush3.bf16.msra.mxu0 %v236_v4 }
   0xf   :  { %215 = vmatprep.subr.bf16.mxu0 %v273_v1  ;;  %p256_p3 = por %p255_p2, %p254_p1 }
  0x11   :  { %p257_p4 = pnand %p256_p3, %p250_p0 }
  0x12   :  { %216 = vmatpush3.bf16.msra.mxu0 %v237_v5 }
  0x13   :  { %217 = vmatprep.subr.bf16.mxu0 %v273_v1 }
  0x16   :  { %218 = vmatpush3.bf16.msra.mxu0 %v238_v6 }
  0x17   :  { %219 = vmatprep.subr.bf16.mxu0 %v273_v1 }
  0x1a   :  { %220 = vmatpush3.bf16.msra.mxu0 %v239_v7 }
  0x1b   :  { %221 = vmatprep.subr.bf16.mxu0 %v273_v1 }
  0x1e   :  { %222 = vmatpush3.bf16.msra.mxu0 %v240_v8 }
  0x21   :  { %224 = vmatmul.mubr.bf16.vlgmr.msra.gmra.mrb[0].mxu0 %v20_v11 }
  0xf4   :  { %v126_v13 = vpop.f32.mrb[0].mxu0 }
  0xf5   :  { %v127_v14 = vadd.f32 %v189_v12, %v126_v13  ;;  %v225_v15 = vpop.f32.mrb[1].mxu0 }
  0xf6   :  { %v129_v16 = vpop.f32.mrb[2].mxu0 }
  0xf7   :  { %v130_v17 = vadd.f32 %v189_v12, %v129_v16  ;;  %v226_v18 = vpop.f32.mrb[3].mxu0  ;;  %v134_v19 = vsel %vm133_vm1, %v127_v14, -inf }
  0xf8   :  { %135 = vmax.xlane.f32.xlu0 %v134_v19 }
  0xf9   :  { %v137_v20 = vsel %vm133_vm1, %v130_v17, -inf }
  0xfc   :  { %138 = vmax.xlane.f32.xlu0 %v137_v20 }
 0x112   :  { %160 = vrot.lane.b32.xlu0 %v127_v14, %s275_s0 }
 0x185   :  { %v136_v21 = vpop.xlane.xlu0 %135 }
 0x186   :  { %v140_v22 = vsub.f32 %v127_v14, %v136_v21 }
 0x188   :  { %v142_v23 = vmul.f32 1.442695, %v140_v22 }
 0x189   :  { %v139_v24 = vpop.xlane.xlu0 %138 }
 0x18a   :  { %241 = vpow2.f32 %v142_v23  ;;  %v141_v25 = vsub.f32 %v130_v17, %v139_v24 }
 0x18c   :  { %v144_v26 = vmul.f32 1.442695, %v141_v25 }
 0x18d   :  { %v161_v27 = vpop.permute.xlu0 %160 }
 0x18e   :  { %243 = vpow2.f32 %v144_v26  ;;  %167 = vst.msk [vmem:[#allocation2] sm:$0xff] %vm166_vm2, %v161_v27 }
 0x194   :  { %v242_v28 = vpop.eup %241 }
 0x195   :  { %v146_v29 = vsel %vm133_vm1, %v242_v28, 0.0 }
 0x196   :  { %147 = vadd.xlane.f32.xlu1 %v146_v29 }
 0x198   :  { %v244_v30 = vpop.eup %243 }
 0x199   :  { %v149_v31 = vsel %vm133_vm1, %v244_v30, 0.0 }
 0x19a   :  { %150 = vadd.xlane.f32.xlu1 %v149_v31 }
 0x1ab   :  { %162 = vrot.lane.b32.xlu1 %v130_v17, %s275_s0 }
 0x223   :  { %v148_v32 = vpop.xlane.xlu1 %147 }
 0x224   :  { %245 = vrcp.f32 %v148_v32 }
 0x227   :  { %v151_v33 = vpop.xlane.xlu1 %150 }
 0x228   :  { %247 = vrcp.f32 %v151_v33 }
 0x22b   :  { %v163_v34 = vpop.permute.xlu1 %162 }
 0x22c   :  { %168 = vst.msk [vmem:[#allocation2 + $0x8] sm:$0xff] %vm166_vm2, %v163_v34 }
 0x22d   :  { %260 = shalt.err (!%p257_p4)
}
 0x22e   :  { %s261_s14 = scalar_lea.hbm %s367_s4, 256 }
 0x22f   :  { %p262_p5 = scmp.ne.s32.totalorder %s367_s4, %s261_s14  ;;  %p265_p6 = scmp.lt.u32.totalorder %s261_s14, %s367_s4 }
 0x231   :  { %p267_p7 = pnand %p265_p6, %p262_p5 }
 0x233   :  { %270 = shalt.err (!%p267_p7)
}
 0x234   :  { %s277_s19 = smov 128   ;;  %s278_s20 = smov 8   ;;  %v246_v35 = vpop.eup %245 }
 0x235   :  { %182 = dma.vmem_to_hbm [thread:$0]  %s177_s2, 256, %s367_s4, [#allocation3], %s277_s19, %s277_s19, %s278_s20   ;;  %v154_v36 = vmul.f32 %v246_v35, %v242_v28  ;;  %v248_v37 = vpop.eup %247 }
 0x236   :  { %v155_v38 = vmul.f32 %v248_v37, %v244_v30 }
 0x237   :  { %156 = vst.msk [vmem:[%s366_s3] sm:$0xff] %vm133_vm1, %v154_v36 }
 0x238   :  { %157 = vst.msk [vmem:[%s366_s3 + $0x8] sm:$0xff] %vm133_vm1, %v155_v38 }
 0x239   :  { %271 = dma.done.wait [#allocation3], 256  }
 0x23a   :  { %272 = vsyncadd [#allocation3], 4294967040 }
 0x23b   :  { %188 = vsyncpa [#allocation3], 1 }

</bundles_post_ra>
